<compile_context>
chip_gen: v5e
topology: v5e:2x2
jax: 0.10.0
libtpu: 0.0.40
codegen_flags: <defaults>
</compile_context>

<pallas_src>
import functools

import jax
import jax.numpy as jnp
import numpy as np
from jax.experimental import pallas as pl
from jax.experimental.pallas import tpu as pltpu


def _round_up(x: int, m: int) -> int:
    return ((x + m - 1) // m) * m


def _vmem_budget():
    """(bytes per input buffer, scoped-VMEM limit) for this TPU generation."""
    try:
        kind = jax.devices()[0].device_kind.lower()
    except Exception:
        kind = ""
    if "v5" in kind or "v6" in kind:
        # 128 MiB physical VMEM: bigger tiles amortize per-step overhead and
        # keep the DMA pipe full on the (lower) HBM bandwidth of v5e.
        return 32 * 1024 * 1024, 80 * 1024 * 1024
    # Conservative default; correct for v7x (64 MiB physical, 32 MiB scoped
    # default): 2 x 16 MiB double-buffered input + small output << 48 MiB.
    return 16 * 1024 * 1024, 48 * 1024 * 1024


def _ctc_argmax_kernel(em_ref, out_ref, carry_ref, *, blank, num_label, lane_dense):
    # First grid step: no previous frame -> sentinel -1 (never equals a label).
    @pl.when(pl.program_id(0) == 0)
    def _init():
        carry_ref[...] = jnp.full((1, 1), -1, jnp.int32)

    em = em_ref[...]                                          # (ts, L)
    ts = em.shape[0]

    # Row-wise argmax with first-index tie-break (matches torch/np argmax).
    lane = jax.lax.broadcasted_iota(jnp.int32, em.shape, 1)   # lane ids
    mx = jnp.max(em, axis=-1, keepdims=True)                  # (ts, 1)
    cand = jnp.where(em == mx, lane, jnp.int32(num_label))
    idx = jnp.min(cand, axis=-1, keepdims=True)               # (ts, 1) int32

    # unique_consecutive: keep frame i iff idx[i] != idx[i-1].  The previous
    # tile's last argmax persists in the (1, 1) VMEM carry across the
    # sequential grid.  The concatenate is a proven lowering path; an SMEM
    # scalar carry (review suggestion) is a minor win not taken here.
    prev = jnp.concatenate([carry_ref[...], idx[:-1, :]], axis=0)   # (ts, 1)
    carry_ref[...] = idx[ts - 1:ts, :]                        # carry forward

    keep = jnp.logical_and(idx != prev, idx != jnp.int32(blank))
    # Guard: an all-NaN / garbage row yields idx == num_label; drop it so the
    # host never indexes labels[] out of range (also covers partial-block
    # garbage rows, which are sliced off anyway).
    keep = jnp.logical_and(keep, idx < jnp.int32(num_label))

    # Single packed result: kept frames carry their label id, dropped -> -1.
    packed = jnp.where(keep, idx, jnp.int32(-1))              # (ts, 1)

    if lane_dense:
        # Sublane column -> lane row (XLU relayout, a slot with slack here):
        # the (1, ts) store is unmasked and the output HBM DMA is dense.
        out_ref[...] = jnp.transpose(packed)                  # (1, ts)
    else:
        out_ref[...] = packed                                 # (ts, 1)


def _build_decode_call(L, ts, num_tiles, blank, vmem_limit, lane_dense):
    kernel = functools.partial(_ctc_argmax_kernel, blank=blank,
                               num_label=L, lane_dense=lane_dense)
    if lane_dense:
        out_shape = jax.ShapeDtypeStruct((num_tiles, 1, ts), jnp.int32)
        out_spec = pl.BlockSpec((None, 1, ts), lambda s: (s, 0, 0))
    else:
        out_shape = jax.ShapeDtypeStruct((num_tiles * ts, 1), jnp.int32)
        out_spec = pl.BlockSpec((ts, 1), lambda s: (s, 0))
    return pl.pallas_call(
        kernel,
        out_shape=out_shape,
        grid=(num_tiles,),
        in_specs=[pl.BlockSpec((ts, L), lambda s: (s, 0))],
        out_specs=out_spec,
        scratch_shapes=[pltpu.VMEM((1, 1), jnp.int32)],
        compiler_params=pltpu.CompilerParams(
            # Sequential carry across tiles -> "arbitrary".
            dimension_semantics=("arbitrary",),
            vmem_limit_bytes=vmem_limit,
        ),
    )


def greedy_ctc_argmax(emission: jax.Array, blank: int = 0,
                      tile_rows: int | None = None,
                      lane_dense: bool | None = None):
    """Packed greedy-CTC result: int32[S]; label id for kept frames, -1 otherwise."""
    S, L = emission.shape
    per_buf_bytes, vmem_limit = _vmem_budget()

    if tile_rows is None:
        # Size by the lane-padded row width the block actually occupies in VMEM.
        padded_row_bytes = _round_up(L, 128) * emission.dtype.itemsize
        tile_rows = max(8, per_buf_bytes // padded_row_bytes)

    ts = min(int(tile_rows), _round_up(S, 8))
    ts = (ts // 128) * 128 if ts >= 128 else max(8, (ts // 8) * 8)
    num_tiles = pl.cdiv(S, ts)   # partial last block: no wrapper-side padding

    args = (L, ts, num_tiles, blank, vmem_limit)
    if lane_dense is None:
        try:
            out = _build_decode_call(*args, lane_dense=True)(emission)
        except Exception:
            # TODO(synk): fallback if the (ts,1)->(1,ts) relayout does not
            # lower on this toolchain; keeps the proven column-store layout.
            out = _build_decode_call(*args, lane_dense=False)(emission)
    else:
        out = _build_decode_call(*args, lane_dense=lane_dense)(emission)
    return out.reshape(-1)[:S]


class GreedyCTCDecoder:
    """JAX/Pallas re-implementation of the PyTorch GreedyCTCDecoder."""

    def __init__(self, labels, blank=0):
        self.labels = labels
        self.blank = blank

    def __call__(self, emission, predicted=True):
        if predicted:
            packed = np.asarray(jax.block_until_ready(
                greedy_ctc_argmax(emission, blank=self.blank)))
            indices = [int(i) for i in packed if i >= 0]
        else:
            # TODO(synk): dynamic-length filtering of pre-decoded indices has
            # no fixed-shape Pallas equivalent; done on host for this path.
            indices = [int(i) for i in np.asarray(emission)
                       if int(i) != self.blank]
        joined = ''.join(self.labels[i] for i in indices)
        return joined.replace('|', ' ').strip().split()


if __name__ == "__main__":
    # Deterministic synthetic setup: 32 labels (blank '-' at index 0, '|' as
    # the word separator), emission of shape [num_seq=100, num_label=32].
    labels = ['-'] + list("abcdefghijklmnopqrstuvwxyz") + ['|', "'", '.', ',', '?']
    assert len(labels) == 32
    blank = 0

    key = jax.random.PRNGKey(0)
    num_seq, num_label = 100, 32
    emission = jax.random.normal(key, (num_seq, num_label), dtype=jnp.float32)
    # Force consecutive repeats (incl. across the TS=32 tile boundary at 31/32)
    # and a couple of blank frames so the mask logic is actually exercised.
    emission = emission.at[15].set(emission[14])
    emission = emission.at[32].set(emission[31])
    emission = emission.at[33].set(emission[31])
    emission = emission.at[40, 0].set(100.0)
    emission = emission.at[41, 0].set(100.0)

    # Host reference (pure numpy).
    em_np = np.asarray(emission)
    ref_idx = em_np.argmax(axis=-1).astype(np.int64)
    prev = np.concatenate([[-1], ref_idx[:-1]])
    ref_keep = (ref_idx != prev) & (ref_idx != blank)
    ref_indices = [int(i) for i in ref_idx[ref_keep]]
    ref_joined = ''.join(labels[i] for i in ref_indices)
    ref_transcript = ref_joined.replace('|', ' ').strip().split()

    # Kernel, default (single-tile, lane-dense output) path.
    packed = np.asarray(jax.block_until_ready(
        greedy_ctc_argmax(emission, blank=blank)))
    assert packed.shape == (num_seq,)
    assert np.array_equal(packed >= 0, ref_keep), "keep-mask mismatch"
    assert np.array_equal(packed[ref_keep], ref_idx[ref_keep]), "argmax mismatch"

    # Kernel, multi-tile path (TS=32 -> 4 tiles, partial last block) exercises
    # the cross-tile carry and the no-padding partial-block path.
    packed_tiled = np.asarray(jax.block_until_ready(
        greedy_ctc_argmax(emission, blank=blank, tile_rows=32)))
    assert np.array_equal(packed, packed_tiled), "tiled/untiled mismatch"

    # Explicitly validate the column-store fallback layout as well.
    packed_col = np.asarray(jax.block_until_ready(
        greedy_ctc_argmax(emission, blank=blank, tile_rows=32, lane_dense=False)))
    assert np.array_equal(packed, packed_col), "column-layout fallback mismatch"

    # End-to-end decoder check.
    decoder = GreedyCTCDecoder(labels, blank=blank)
    transcript = decoder(emission, predicted=True)
    assert transcript == ref_transcript, "transcript mismatch"

    print("KERNEL_OK")
</pallas_src>

<mosaic_0001>
module attributes {stable_mosaic.version = 11 : i64} {
  func.func @_ctc_argmax_kernel(%arg0: i32, %arg1: memref<104x32xf32, #tpu.memory_space<vmem>>, %arg2: memref<1x1x104xi32, #tpu.memory_space<vmem>>, %arg3: memref<1x1xi32, #tpu.memory_space<vmem>>) attributes {dimension_semantics = [#tpu.dimension_semantics<arbitrary>], iteration_bounds = array<i64: 1>, scalar_prefetch = 0 : i64, scratch_operands = 1 : i64, tpu.core_type = #tpu.core_type<tc>, window_params = [{transform_indices = @transform_0, window_bounds = array<i64: 104, 32>}, {transform_indices = @transform_1, window_bounds = array<i64: 1, 1, 104>}]} {
    %c0_i32 = arith.constant 0 : i32
    %0 = arith.cmpi eq, %arg0, %c0_i32 : i32
    %1 = arith.extui %0 : i1 to i32
    %c0_i32_0 = arith.constant 0 : i32
    %2 = arith.cmpi ne, %1, %c0_i32_0 : i32
    scf.if %2 {
      %c-1_i32_12 = arith.constant -1 : i32
      %31 = vector.broadcast %c-1_i32_12 : i32 to vector<1x1xi32>
      %c0_13 = arith.constant 0 : index
      %c0_14 = arith.constant 0 : index
      %32 = vector.load %arg3[%c0_13, %c0_14] : memref<1x1xi32, #tpu.memory_space<vmem>>, vector<1x1xi32>
      tpu.vector_store %arg3[%c0_13, %c0_14], %31 {strides = array<i32>} : memref<1x1xi32, #tpu.memory_space<vmem>>, vector<1x1xi32>,
    } else {
    }
    %c0 = arith.constant 0 : index
    %c0_1 = arith.constant 0 : index
    %3 = vector.load %arg1[%c0, %c0_1] : memref<104x32xf32, #tpu.memory_space<vmem>>, vector<104x32xf32>
    %4 = tpu.iota {dimensions = array<i32: 1>} : vector<104x32xi32>
    %cst = arith.constant dense<0xFF800000> : vector<104xf32>
    %5 = vector.multi_reduction <maximumf>, %3, %cst [1] : vector<104x32xf32> to vector<104xf32>
    %6 = vector.shape_cast %5 : vector<104xf32> to vector<104x1xf32>
    %7 = vector.broadcast %6 : vector<104x1xf32> to vector<104x32xf32>
    %8 = arith.cmpf oeq, %3, %7 : vector<104x32xf32>
    %c32_i32 = arith.constant 32 : i32
    %9 = vector.broadcast %c32_i32 : i32 to vector<104x32xi32>
    %10 = arith.select %8, %4, %9 : vector<104x32xi1>, vector<104x32xi32>
    %cst_2 = arith.constant dense<2147483647> : vector<104xi32>
    %11 = vector.multi_reduction <minsi>, %10, %cst_2 [1] : vector<104x32xi32> to vector<104xi32>
    %12 = vector.shape_cast %11 : vector<104xi32> to vector<104x1xi32>
    %c0_3 = arith.constant 0 : index
    %c0_4 = arith.constant 0 : index
    %13 = vector.load %arg3[%c0_3, %c0_4] : memref<1x1xi32, #tpu.memory_space<vmem>>, vector<1x1xi32>
    %14 = vector.extract_strided_slice %12 {offsets = [0, 0], sizes = [103, 1], strides = [1, 1]} : vector<104x1xi32> to vector<103x1xi32>
    %15 = tpu.concatenate %13, %14 in 0 : vector<1x1xi32>, vector<103x1xi32> -> vector<104x1xi32>
    %16 = vector.extract_strided_slice %12 {offsets = [103, 0], sizes = [1, 1], strides = [1, 1]} : vector<104x1xi32> to vector<1x1xi32>
    %c0_5 = arith.constant 0 : index
    %c0_6 = arith.constant 0 : index
    %17 = vector.load %arg3[%c0_5, %c0_6] : memref<1x1xi32, #tpu.memory_space<vmem>>, vector<1x1xi32>
    tpu.vector_store %arg3[%c0_5, %c0_6], %16 {strides = array<i32>} : memref<1x1xi32, #tpu.memory_space<vmem>>, vector<1x1xi32>,
    %18 = arith.cmpi ne, %12, %15 : vector<104x1xi32>
    %c0_i32_7 = arith.constant 0 : i32
    %19 = vector.broadcast %c0_i32_7 : i32 to vector<104x1xi32>
    %20 = arith.cmpi ne, %12, %19 : vector<104x1xi32>
    %21 = arith.andi %18, %20 : vector<104x1xi1>
    %c32_i32_8 = arith.constant 32 : i32
    %22 = vector.broadcast %c32_i32_8 : i32 to vector<104x1xi32>
    %23 = arith.cmpi slt, %12, %22 : vector<104x1xi32>
    %24 = arith.andi %21, %23 : vector<104x1xi1>
    %c-1_i32 = arith.constant -1 : i32
    %25 = vector.broadcast %c-1_i32 : i32 to vector<104x1xi32>
    %26 = arith.select %24, %12, %25 : vector<104x1xi1>, vector<104x1xi32>
    %27 = tpu.transpose %26, [1, 0] : vector<104x1xi32> -> vector<1x104xi32>
    %c0_9 = arith.constant 0 : index
    %c0_10 = arith.constant 0 : index
    %c0_11 = arith.constant 0 : index
    %28 = vector.load %arg2[%c0_9, %c0_10, %c0_11] : memref<1x1x104xi32, #tpu.memory_space<vmem>>, vector<1x1x104xi32>
    %29 = vector.shape_cast %28 : vector<1x1x104xi32> to vector<1x104xi32>
    %30 = vector.shape_cast %27 : vector<1x104xi32> to vector<1x1x104xi32>
    tpu.vector_store %arg2[%c0_9, %c0_10, %c0_11], %30 {strides = array<i32>} : memref<1x1x104xi32, #tpu.memory_space<vmem>>, vector<1x1x104xi32>,
    return
  }
  func.func @transform_0(%arg0: i32) -> (i32, i32) {
    %c0_i32 = arith.constant 0 : i32
    %c0_i32_0 = arith.constant 0 : i32
    return %arg0, %c0_i32 : i32, i32
  }
  func.func @transform_1(%arg0: i32) -> (i32, i32, i32) {
    %c0_i32 = arith.constant 0 : i32
    %c0_i32_0 = arith.constant 0 : i32
    %c0_i32_1 = arith.constant 0 : i32
    return %arg0, %c0_i32, %c0_i32_0 : i32, i32, i32
  }
}

module attributes {stable_mosaic.version = 11 : i64} {
  func.func @_ctc_argmax_kernel(%arg0: i32, %arg1: memref<104x32xf32, #tpu.memory_space<vmem>>, %arg2: memref<104x1xi32, #tpu.memory_space<vmem>>, %arg3: memref<1x1xi32, #tpu.memory_space<vmem>>) attributes {dimension_semantics = [#tpu.dimension_semantics<arbitrary>], iteration_bounds = array<i64: 1>, scalar_prefetch = 0 : i64, scratch_operands = 1 : i64, tpu.core_type = #tpu.core_type<tc>, window_params = [{transform_indices = @transform_0, window_bounds = array<i64: 104, 32>}, {transform_indices = @transform_1, window_bounds = array<i64: 104, 1>}]} {
    %c0_i32 = arith.constant 0 : i32
    %0 = arith.cmpi eq, %arg0, %c0_i32 : i32
    %1 = arith.extui %0 : i1 to i32
    %c0_i32_0 = arith.constant 0 : i32
    %2 = arith.cmpi ne, %1, %c0_i32_0 : i32
    scf.if %2 {
      %c-1_i32_11 = arith.constant -1 : i32
      %28 = vector.broadcast %c-1_i32_11 : i32 to vector<1x1xi32>
      %c0_12 = arith.constant 0 : index
      %c0_13 = arith.constant 0 : index
      %29 = vector.load %arg3[%c0_12, %c0_13] : memref<1x1xi32, #tpu.memory_space<vmem>>, vector<1x1xi32>
      tpu.vector_store %arg3[%c0_12, %c0_13], %28 {strides = array<i32>} : memref<1x1xi32, #tpu.memory_space<vmem>>, vector<1x1xi32>,
    } else {
    }
    %c0 = arith.constant 0 : index
    %c0_1 = arith.constant 0 : index
    %3 = vector.load %arg1[%c0, %c0_1] : memref<104x32xf32, #tpu.memory_space<vmem>>, vector<104x32xf32>
    %4 = tpu.iota {dimensions = array<i32: 1>} : vector<104x32xi32>
    %cst = arith.constant dense<0xFF800000> : vector<104xf32>
    %5 = vector.multi_reduction <maximumf>, %3, %cst [1] : vector<104x32xf32> to vector<104xf32>
    %6 = vector.shape_cast %5 : vector<104xf32> to vector<104x1xf32>
    %7 = vector.broadcast %6 : vector<104x1xf32> to vector<104x32xf32>
    %8 = arith.cmpf oeq, %3, %7 : vector<104x32xf32>
    %c32_i32 = arith.constant 32 : i32
    %9 = vector.broadcast %c32_i32 : i32 to vector<104x32xi32>
    %10 = arith.select %8, %4, %9 : vector<104x32xi1>, vector<104x32xi32>
    %cst_2 = arith.constant dense<2147483647> : vector<104xi32>
    %11 = vector.multi_reduction <minsi>, %10, %cst_2 [1] : vector<104x32xi32> to vector<104xi32>
    %12 = vector.shape_cast %11 : vector<104xi32> to vector<104x1xi32>
    %c0_3 = arith.constant 0 : index
    %c0_4 = arith.constant 0 : index
    %13 = vector.load %arg3[%c0_3, %c0_4] : memref<1x1xi32, #tpu.memory_space<vmem>>, vector<1x1xi32>
    %14 = vector.extract_strided_slice %12 {offsets = [0, 0], sizes = [103, 1], strides = [1, 1]} : vector<104x1xi32> to vector<103x1xi32>
    %15 = tpu.concatenate %13, %14 in 0 : vector<1x1xi32>, vector<103x1xi32> -> vector<104x1xi32>
    %16 = vector.extract_strided_slice %12 {offsets = [103, 0], sizes = [1, 1], strides = [1, 1]} : vector<104x1xi32> to vector<1x1xi32>
    %c0_5 = arith.constant 0 : index
    %c0_6 = arith.constant 0 : index
    %17 = vector.load %arg3[%c0_5, %c0_6] : memref<1x1xi32, #tpu.memory_space<vmem>>, vector<1x1xi32>
    tpu.vector_store %arg3[%c0_5, %c0_6], %16 {strides = array<i32>} : memref<1x1xi32, #tpu.memory_space<vmem>>, vector<1x1xi32>,
    %18 = arith.cmpi ne, %12, %15 : vector<104x1xi32>
    %c0_i32_7 = arith.constant 0 : i32
    %19 = vector.broadcast %c0_i32_7 : i32 to vector<104x1xi32>
    %20 = arith.cmpi ne, %12, %19 : vector<104x1xi32>
    %21 = arith.andi %18, %20 : vector<104x1xi1>
    %c32_i32_8 = arith.constant 32 : i32
    %22 = vector.broadcast %c32_i32_8 : i32 to vector<104x1xi32>
    %23 = arith.cmpi slt, %12, %22 : vector<104x1xi32>
    %24 = arith.andi %21, %23 : vector<104x1xi1>
    %c-1_i32 = arith.constant -1 : i32
    %25 = vector.broadcast %c-1_i32 : i32 to vector<104x1xi32>
    %26 = arith.select %24, %12, %25 : vector<104x1xi1>, vector<104x1xi32>
    %c0_9 = arith.constant 0 : index
    %c0_10 = arith.constant 0 : index
    %27 = vector.load %arg2[%c0_9, %c0_10] : memref<104x1xi32, #tpu.memory_space<vmem>>, vector<104x1xi32>
    tpu.vector_store %arg2[%c0_9, %c0_10], %26 {strides = array<i32>} : memref<104x1xi32, #tpu.memory_space<vmem>>, vector<104x1xi32>,
    return
  }
  func.func @transform_0(%arg0: i32) -> (i32, i32) {
    %c0_i32 = arith.constant 0 : i32
    %c0_i32_0 = arith.constant 0 : i32
    return %arg0, %c0_i32 : i32, i32
  }
  func.func @transform_1(%arg0: i32) -> (i32, i32) {
    %c0_i32 = arith.constant 0 : i32
    %c0_i32_0 = arith.constant 0 : i32
    return %arg0, %c0_i32 : i32, i32
  }
}

</mosaic_0001>

<bundles_post_ra>
// kernel: tpu_custom_call.1
= control target key start
LH: loop header
LB: loop body
LE: loop exit
PB: predicated region body
PF: predicated region fallthrough
CT: control target
= control target key end

     0   :  { %vm30_vm0 = vcmask 261120   ;;  %s894_s0 = inlined_call_operand.vmem [shape: f32[100,32], index: 0, kind: input, shape index: {}]   ;;  %s895_s1 = inlined_call_operand.hbm [shape: s32[1,1,104], index: 1, kind: output, shape index: {}]  }
   0x1   :  { %v493_v0 = vld [vmem:[%s894_s0 + $0x20] sm:$0xff]  ;;  %v17_v1 = vld [vmem:[%s894_s0 + $0x10] sm:$0xff]  ;;  %v20_v6 = vld [vmem:[%s894_s0 + $0x28] sm:$0xff] }
   0x2   :  { %v15_v2 = vld [vmem:[%s894_s0] sm:$0xff]  ;;  %v43_v3 = vsel %vm30_vm0, %v493_v0, -inf  ;;  %v37_v4 = vsel %vm30_vm0, %v17_v1, -inf  ;;  %v18_v7 = vld [vmem:[%s894_s0 + $0x18] sm:$0xff] }
   0x3   :  { %v31_v5 = vsel %vm30_vm0, %v15_v2, -inf  ;;  %44 = vmax.xlane.f32.xlu2 %v43_v3  ;;  %38 = vmax.xlane.f32.xlu1 %v37_v4 }
   0x4   :  { %32 = vmax.xlane.f32.xlu0 %v31_v5 }
   0x5   :  { %6 = vsyncpa [#allocation4], 0  ;;  %v16_v8 = vld [vmem:[%s894_s0 + $0x8] sm:$0xff]  ;;  %v46_v9 = vsel %vm30_vm0, %v20_v6, -inf  ;;  %v40_v10 = vsel %vm30_vm0, %v18_v7, -inf  ;;  %v520_v12 = vld [vmem:[%s894_s0 + $0x40] sm:$0xff]  ;;  %v28_v26 = vlaneseq }
   0x6   :  { %v34_v11 = vsel %vm30_vm0, %v16_v8, -inf  ;;  %v525_v13 = vld [vmem:[%s894_s0 + $0x38] sm:$0xff]  ;;  %v530_v14 = vld [vmem:[%s894_s0 + $0x30] sm:$0xff]  ;;  %v55_v15 = vsel %vm30_vm0, %v520_v12, -inf  ;;  %v551_v20 = vld [vmem:[%s894_s0 + $0x48] sm:$0xff]  ;;  %s440_s6 = sshll.u32 %s895_s1, 4  ;;  %s441_s6 = int_to_ptr.hbm [resolvable:$true] %s440_s6 }
   0x7   :  { %v52_v16 = vsel %vm30_vm0, %v525_v13, -inf  ;;  %v49_v17 = vsel %vm30_vm0, %v530_v14, -inf  ;;  %v541_v18 = vld [vmem:[%s894_s0 + $0x58] sm:$0xff]  ;;  %v546_v19 = vld [vmem:[%s894_s0 + $0x50] sm:$0xff]  ;;  %v58_v23 = vsel %vm30_vm0, %v551_v20, -inf  ;;  %v562_v24 = vld [vmem:[%s894_s0 + $0x60] sm:$0xff] }
   0x8   :  { %v64_v21 = vsel %vm30_vm0, %v541_v18, -inf  ;;  %v61_v22 = vsel %vm30_vm0, %v546_v19, -inf  ;;  %v67_v25 = vsel %vm30_vm0, %v562_v24, -inf  ;;  %v566_v27 = vand.u32 127, %v28_v26  ;;  %s479_s0 = smov [#allocation3]  }
   0x9   :  { %s438_s3 = sshll.u32 %s479_s0, 4  ;;  %s439_s3 = int_to_ptr.vmem [resolvable:$true] %s438_s3 }
   0xb   :  { %47 = vmax.xlane.f32.xlu2 %v46_v9  ;;  %41 = vmax.xlane.f32.xlu1 %v40_v10 }
   0xc   :  { %35 = vmax.xlane.f32.xlu0 %v34_v11 }
  0x13   :  { %56 = vmax.xlane.f32.xlu2 %v55_v15  ;;  %53 = vmax.xlane.f32.xlu1 %v52_v16 }
  0x14   :  { %50 = vmax.xlane.f32.xlu0 %v49_v17 }
  0x1b   :  { %65 = vmax.xlane.f32.xlu2 %v64_v21  ;;  %62 = vmax.xlane.f32.xlu1 %v61_v22 }
  0x1c   :  { %59 = vmax.xlane.f32.xlu0 %v58_v23 }
  0x24   :  { %68 = vmax.xlane.f32.xlu0 %v67_v25 }
  0x76   :  { %v45_v28 = vpop.xlane.xlu2 %44  ;;  %v39_v29 = vpop.xlane.xlu1 %38 }
  0x77   :  { %vm72_vm1 = vcmp.eq.f32.partialorder %v17_v1, %v39_v29  ;;  %v33_v30 = vpop.xlane.xlu0 %32  ;;  %vm74_vm3 = vcmp.eq.f32.partialorder %v493_v0, %v45_v28 }
  0x78   :  { %v85_v31 = vsel %vm72_vm1, %v566_v27, 32  ;;  %vm70_vm2 = vcmp.eq.f32.partialorder %v15_v2, %v33_v30  ;;  %v87_v44 = vsel %vm74_vm3, %v566_v27, 32 }
  0x79   :  { %v570_v32 = vsel %vm30_vm0, %v85_v31, 2147483647  ;;  %v83_v33 = vsel %vm70_vm2, %v566_v27, 32  ;;  %v602_v52 = vsel %vm30_vm0, %v87_v44, 2147483647 }
  0x7a   :  { %v574_v34 = vsel %vm30_vm0, %v83_v33, 2147483647  ;;  %v128_v35 = vshra.s32 %v570_v32, 16  ;;  %v158_v59 = vshra.s32 %v602_v52, 16  ;;  %v127_v31 = vand.u32 65535, %v570_v32 }
  0x7b   :  { %v98_v36 = vshra.s32 %v574_v34, 16  ;;  %v97_v33 = vand.u32 65535, %v574_v34 }
  0x7c   :  { %v578_v37 = vcvt.s32.f32 %v128_v35  ;;  %v627_v2 = vcvt.s32.f32 %v158_v59 }
  0x7d   :  { %v580_v38 = vcvt.s32.f32 %v98_v36  ;;  %v99_v36 = vcvt.s32.f32 %v97_v33 }
  0x7e   :  { %v48_v39 = vpop.xlane.xlu2 %47  ;;  %v42_v40 = vpop.xlane.xlu1 %41  ;;  %131 = vmin.xlane.f32.xlu0 %v578_v37 }
  0x7f   :  { %vm75_vm4 = vcmp.eq.f32.partialorder %v20_v6, %v48_v39  ;;  %vm73_vm5 = vcmp.eq.f32.partialorder %v18_v7, %v42_v40  ;;  %101 = vmin.xlane.f32.xlu1 %v580_v38  ;;  %v36_v41 = vpop.xlane.xlu0 %35 }
  0x80   :  { %v88_v42 = vsel %vm75_vm4, %v566_v27, 32  ;;  %v86_v43 = vsel %vm73_vm5, %v566_v27, 32  ;;  %vm71_vm6 = vcmp.eq.f32.partialorder %v16_v8, %v36_v41 }
  0x81   :  { %v589_v45 = vsel %vm30_vm0, %v88_v42, 2147483647  ;;  %v592_v46 = vsel %vm30_vm0, %v86_v43, 2147483647  ;;  %v84_v47 = vsel %vm71_vm6, %v566_v27, 32 }
  0x82   :  { %v596_v48 = vsel %vm30_vm0, %v84_v47, 2147483647  ;;  %v173_v49 = vshra.s32 %v589_v45, 16  ;;  %v143_v50 = vshra.s32 %v592_v46, 16  ;;  %v142_v32 = vand.u32 65535, %v592_v46 }
  0x83   :  { %v113_v51 = vshra.s32 %v596_v48, 16  ;;  %v112_v34 = vand.u32 65535, %v596_v48  ;;  %v172_v41 = vand.u32 65535, %v589_v45  ;;  %v157_v48 = vand.u32 65535, %v602_v52 }
  0x84   :  { %v604_v53 = vcvt.s32.f32 %v173_v49  ;;  %v606_v54 = vcvt.s32.f32 %v143_v50 }
  0x85   :  { %v608_v55 = vcvt.s32.f32 %v113_v51  ;;  %v114_v47 = vcvt.s32.f32 %v112_v34  ;;  %v174_v49 = vcvt.s32.f32 %v172_v41 }
  0x86   :  { %v57_v56 = vpop.xlane.xlu2 %56  ;;  %176 = vmin.xlane.f32.xlu0 %v604_v53  ;;  %v54_v57 = vpop.xlane.xlu1 %53 }
  0x87   :  { %vm78_vm7 = vcmp.eq.f32.partialorder %v520_v12, %v57_v56  ;;  %146 = vmin.xlane.f32.xlu1 %v606_v54  ;;  %116 = vmin.xlane.f32.xlu2 %v608_v55  ;;  %v51_v58 = vpop.xlane.xlu0 %50  ;;  %vm77_vm8 = vcmp.eq.f32.partialorder %v525_v13, %v54_v57  ;;  %v159_v57 = vcvt.s32.f32 %v157_v48 }
  0x88   :  { %v91_v60 = vsel %vm78_vm7, %v566_v27, 32  ;;  %vm76_vm9 = vcmp.eq.f32.partialorder %v530_v14, %v51_v58  ;;  %v90_v63 = vsel %vm77_vm8, %v566_v27, 32 }
  0x89   :  { %v619_v61 = vsel %vm30_vm0, %v91_v60, 2147483647  ;;  %v89_v62 = vsel %vm76_vm9, %v566_v27, 32  ;;  %v631_v4 = vsel %vm30_vm0, %v90_v63, 2147483647 }
  0x8a   :  { %v624_v0 = vsel %vm30_vm0, %v89_v62, 2147483647  ;;  %v218_v1 = vshra.s32 %v619_v61, 16  ;;  %v203_v10 = vshra.s32 %v631_v4, 16  ;;  %v217_v51 = vand.u32 65535, %v619_v61 }
  0x8b   :  { %v188_v3 = vshra.s32 %v624_v0, 16  ;;  %v187_v50 = vand.u32 65535, %v624_v0  ;;  %v202_v61 = vand.u32 65535, %v631_v4 }
  0x8c   :  { %v633_v5 = vcvt.s32.f32 %v218_v1  ;;  %v654_v17 = vcvt.s32.f32 %v203_v10  ;;  %v219_v58 = vcvt.s32.f32 %v217_v51 }
  0x8d   :  { %v635_v6 = vcvt.s32.f32 %v188_v3  ;;  %v204_v3 = vcvt.s32.f32 %v202_v61 }
  0x8e   :  { %v66_v7 = vpop.xlane.xlu2 %65  ;;  %221 = vmin.xlane.f32.xlu0 %v633_v5  ;;  %v63_v8 = vpop.xlane.xlu1 %62 }
  0x8f   :  { %vm81_vm10 = vcmp.eq.f32.partialorder %v541_v18, %v66_v7  ;;  %161 = vmin.xlane.f32.xlu2 %v627_v2  ;;  %191 = vmin.xlane.f32.xlu1 %v635_v6  ;;  %v60_v9 = vpop.xlane.xlu0 %59  ;;  %vm80_vm11 = vcmp.eq.f32.partialorder %v546_v19, %v63_v8 }
  0x90   :  { %v94_v11 = vsel %vm81_vm10, %v566_v27, 32  ;;  %vm79_vm12 = vcmp.eq.f32.partialorder %v551_v20, %v60_v9  ;;  %v93_v14 = vsel %vm80_vm11, %v566_v27, 32  ;;  %vm13_vm11 = vcmask 0  }
  0x91   :  { %v646_v12 = vsel %vm30_vm0, %v94_v11, 2147483647  ;;  %v92_v13 = vsel %vm79_vm12, %v566_v27, 32  ;;  %v658_v19 = vsel %vm30_vm0, %v93_v14, 2147483647  ;;  %vm292_vm12 = vcmask 1040384  }
  0x92   :  { %v651_v15 = vsel %vm30_vm0, %v92_v13, 2147483647  ;;  %v263_v16 = vshra.s32 %v646_v12, 16  ;;  %v248_v23 = vshra.s32 %v658_v19, 16  ;;  %v262_v63 = vand.u32 65535, %v646_v12 }
  0x93   :  { %v233_v18 = vshra.s32 %v651_v15, 16  ;;  %v232_v62 = vand.u32 65535, %v651_v15  ;;  %v247_v9 = vand.u32 65535, %v658_v19 }
  0x94   :  { %v660_v20 = vcvt.s32.f32 %v263_v16  ;;  %v673_v28 = vcvt.s32.f32 %v248_v23 }
  0x95   :  { %v662_v21 = vcvt.s32.f32 %v233_v18  ;;  %v249_v13 = vcvt.s32.f32 %v247_v9 }
  0x96   :  { %266 = vmin.xlane.f32.xlu0 %v660_v20 }
  0x97   :  { %206 = vmin.xlane.f32.xlu2 %v654_v17  ;;  %236 = vmin.xlane.f32.xlu1 %v662_v21  ;;  %v69_v22 = vpop.xlane.xlu0 %68 }
  0x98   :  { %vm82_vm13 = vcmp.eq.f32.partialorder %v562_v24, %v69_v22 }
  0x99   :  { %v95_v25 = vsel %vm82_vm13, %v566_v27, 32  ;;  %v129_v27 = vcvt.s32.f32 %v127_v31 }
  0x9a   :  { %v671_v26 = vsel %vm30_vm0, %v95_v25, 2147483647 }
  0x9b   :  { %v278_v29 = vshra.s32 %v671_v26, 16  ;;  %v277_v10 = vand.u32 65535, %v671_v26 }
  0x9d   :  { %v676_v30 = vcvt.s32.f32 %v278_v29  ;;  %v279_v14 = vcvt.s32.f32 %v277_v10 }
  0x9f   :  { %251 = vmin.xlane.f32.xlu2 %v673_v28  ;;  %281 = vmin.xlane.f32.xlu1 %v676_v30 }
  0xf1   :  { %v682_v24 = vpop.xlane.xlu0 %131 }
  0xf2   :  { %v684_v35 = vpop.xlane.xlu1 %101  ;;  %vm133_vm14 = vcmp.eq.f32.partialorder %v578_v37, %v682_v24  ;;  %v144_v37 = vcvt.s32.f32 %v142_v32  ;;  %v138_v23 = vcvt.f32.s32 %v682_v24 }
  0xf3   :  { %vm103_vm15 = vcmp.eq.f32.partialorder %v580_v38, %v684_v35  ;;  %v134_v39 = vsel %vm133_vm14, %v129_v27, inf  ;;  %v108_v18 = vcvt.f32.s32 %v684_v35 }
  0xf4   :  { %v104_v40 = vsel %vm103_vm15, %v99_v36, inf  ;;  %135 = vmin.xlane.f32.xlu1 %v134_v39  ;;  %v139_v33 = vshll.u32 %v138_v23, 16 }
  0xf5   :  { %105 = vmin.xlane.f32.xlu2 %v104_v40 }
  0xf9   :  { %v693_v42 = vpop.xlane.xlu0 %176 }
  0xfa   :  { %v695_v43 = vpop.xlane.xlu1 %146  ;;  %v697_v44 = vpop.xlane.xlu2 %116  ;;  %vm178_vm0 = vcmp.eq.f32.partialorder %v604_v53, %v693_v42 }
  0xfb   :  { %vm148_vm1 = vcmp.eq.f32.partialorder %v606_v54, %v695_v43  ;;  %vm118_vm2 = vcmp.eq.f32.partialorder %v608_v55, %v697_v44  ;;  %v179_v46 = vsel %vm178_vm0, %v174_v49, inf  ;;  %v189_v55 = vcvt.s32.f32 %v187_v50 }
  0xfc   :  { %v149_v38 = vsel %vm148_vm1, %v144_v37, inf  ;;  %v119_v45 = vsel %vm118_vm2, %v114_v47, inf  ;;  %180 = vmin.xlane.f32.xlu1 %v179_v46  ;;  %v153_v26 = vcvt.f32.s32 %v695_v43  ;;  %v183_v43 = vcvt.f32.s32 %v693_v42 }
  0xfd   :  { %150 = vmin.xlane.f32.xlu2 %v149_v38  ;;  %120 = vmin.xlane.f32.xlu0 %v119_v45 }
  0xfe   :  { %v154_v36 = vshll.u32 %v153_v26, 16  ;;  %v184_v51 = vshll.u32 %v183_v43, 16 }
 0x101   :  { %v708_v56 = vpop.xlane.xlu0 %221 }
 0x102   :  { %v710_v53 = vpop.xlane.xlu2 %161  ;;  %v712_v54 = vpop.xlane.xlu1 %191  ;;  %vm223_vm3 = vcmp.eq.f32.partialorder %v633_v5, %v708_v56  ;;  %v234_v5 = vcvt.s32.f32 %v232_v62  ;;  %v228_v42 = vcvt.f32.s32 %v708_v56 }
 0x103   :  { %vm163_vm4 = vcmp.eq.f32.partialorder %v627_v2, %v710_v53  ;;  %vm193_vm5 = vcmp.eq.f32.partialorder %v635_v6, %v712_v54  ;;  %v224_v60 = vsel %vm223_vm3, %v219_v58, inf  ;;  %v264_v6 = vcvt.s32.f32 %v262_v63 }
 0x104   :  { %v164_v52 = vsel %vm163_vm4, %v159_v57, inf  ;;  %v194_v59 = vsel %vm193_vm5, %v189_v55, inf  ;;  %225 = vmin.xlane.f32.xlu1 %v224_v60  ;;  %v198_v37 = vcvt.f32.s32 %v712_v54 }
 0x105   :  { %165 = vmin.xlane.f32.xlu0 %v164_v52  ;;  %195 = vmin.xlane.f32.xlu2 %v194_v59 }
 0x106   :  { %v199_v55 = vshll.u32 %v198_v37, 16 }
 0x109   :  { %v723_v0 = vpop.xlane.xlu0 %266 }
 0x10a   :  { %v725_v1 = vpop.xlane.xlu2 %206  ;;  %v727_v2 = vpop.xlane.xlu1 %236  ;;  %vm268_vm6 = vcmp.eq.f32.partialorder %v660_v20, %v723_v0 }
 0x10b   :  { %vm208_vm7 = vcmp.eq.f32.partialorder %v654_v17, %v725_v1  ;;  %vm238_vm8 = vcmp.eq.f32.partialorder %v662_v21, %v727_v2  ;;  %v269_v8 = vsel %vm268_vm6, %v264_v6, inf  ;;  %v478_v17 = vmov 4294967295  }
 0x10c   :  { %v209_v4 = vsel %vm208_vm7, %v204_v3, inf  ;;  %v239_v7 = vsel %vm238_vm8, %v234_v5, inf  ;;  %270 = vmin.xlane.f32.xlu1 %v269_v8  ;;  %14 = vst.msk [vmem:[#allocation2] sm:$0x1] %vm13_vm11, %v478_v17  ;;  %v109_v21 = vshll.u32 %v108_v18, 16  ;;  %v213_v63 = vcvt.f32.s32 %v725_v1 }
 0x10d   :  { %210 = vmin.xlane.f32.xlu0 %v209_v4  ;;  %240 = vmin.xlane.f32.xlu2 %v239_v7  ;;  %v243_v3 = vcvt.f32.s32 %v727_v2  ;;  %v229_v8 = vshll.u32 %v228_v42, 16 }
 0x112   :  { %v737_v11 = vpop.xlane.xlu2 %251  ;;  %v739_v12 = vpop.xlane.xlu1 %281 }
 0x113   :  { %vm253_vm9 = vcmp.eq.f32.partialorder %v673_v28, %v737_v11  ;;  %vm283_vm10 = vcmp.eq.f32.partialorder %v676_v30, %v739_v12  ;;  %v123_v28 = vcvt.f32.s32 %v697_v44  ;;  %v291_v29 = vld [vmem:[#allocation2] sm:$0x1]  ;;  %v168_v44 = vcvt.f32.s32 %v710_v53 }
 0x114   :  { %v254_v15 = vsel %vm253_vm9, %v249_v13, inf  ;;  %v284_v16 = vsel %vm283_vm10, %v279_v14, inf  ;;  %v214_v13 = vshll.u32 %v213_v63, 16  ;;  %v244_v14 = vshll.u32 %v243_v3, 16 }
 0x115   :  { %255 = vmin.xlane.f32.xlu0 %v254_v15  ;;  %285 = vmin.xlane.f32.xlu2 %v284_v16  ;;  %v124_v35 = vshll.u32 %v123_v28, 16  ;;  %v169_v57 = vshll.u32 %v168_v44, 16  ;;  %v273_v28 = vcvt.f32.s32 %v723_v0 }
 0x167   :  { %v136_v19 = vpop.xlane.xlu1 %135 }
 0x168   :  { %v106_v20 = vpop.xlane.xlu2 %105  ;;  %v137_v30 = vcvt.f32.s32 %v136_v19 }
 0x169   :  { %v107_v22 = vcvt.f32.s32 %v106_v20 }
 0x16a   :  { %v750_v32 = vadd.s32 %v139_v33, %v137_v30  ;;  %v288_v30 = vcvt.f32.s32 %v739_v12 }
 0x16b   :  { %v110_v25 = vadd.s32 %v109_v21, %v107_v22 }
 0x16c   :  { %v296_v48 = vrot.slane %v750_v32, 7  ;;  %vm336_vm9 = vcmp.ne.s32.totalorder %v750_v32, 0  ;;  %vm362_vm10 = vcmp.lt.s32.totalorder %v750_v32, 32  ;;  %v289_v43 = vshll.u32 %v288_v30, 16 }
 0x16d   :  { %v293_v31 = vrot.slane %v110_v25, 7  ;;  %vm334_vm14 = vcmp.ne.s32.totalorder %v110_v25, 0  ;;  %vm360_vm0 = vcmp.lt.s32.totalorder %v110_v25, 32 }
 0x16f   :  { %v318_v27 = vsel %vm292_vm12, %v291_v29, %v293_v31  ;;  %v181_v34 = vpop.xlane.xlu1 %180  ;;  %v258_v29 = vcvt.f32.s32 %v737_v11 }
 0x170   :  { %v151_v39 = vpop.xlane.xlu2 %150  ;;  %v121_v40 = vpop.xlane.xlu0 %120  ;;  %vm321_vm13 = vcmp.ne.s32.totalorder %v110_v25, %v318_v27  ;;  %v182_v45 = vcvt.f32.s32 %v181_v34 }
 0x171   :  { %v152_v24 = vcvt.f32.s32 %v151_v39  ;;  %v122_v41 = vcvt.f32.s32 %v121_v40  ;;  %vm347_vm15 = vmand %vm321_vm13, %vm334_vm14  ;;  %v274_v40 = vshll.u32 %v273_v28, 16 }
 0x172   :  { %vm373_vm1 = vmand %vm347_vm15, %vm360_vm0  ;;  %v765_v60 = vadd.s32 %v184_v51, %v182_v45 }
 0x173   :  { %v755_v47 = vadd.s32 %v154_v36, %v152_v24  ;;  %v125_v49 = vadd.s32 %v124_v35, %v122_v41  ;;  %v386_v38 = vsel %vm373_vm1, %v110_v25, 4294967295 }
 0x174   :  { %399 = vxpose.xlu0.b32.start [1/13] (short) (narrow) %v386_v38, 8  ;;  %v302_v10 = vrot.slane %v765_v60, 7 }
 0x175   :  { %v294_v46 = vrot.slane %v125_v49, 7  ;;  %v298_v50 = vrot.slane %v755_v47, 7  ;;  %vm335_vm3 = vcmp.ne.s32.totalorder %v125_v49, 0  ;;  %vm361_vm7 = vcmp.lt.s32.totalorder %v125_v49, 32 }
 0x176   :  { %vm337_vm14 = vcmp.ne.s32.totalorder %v755_v47, 0  ;;  %vm363_vm0 = vcmp.lt.s32.totalorder %v755_v47, 32 }
 0x177   :  { %v295_v53 = vsel %vm292_vm12, %v293_v31, %v294_v46  ;;  %v297_v54 = vsel %vm292_vm12, %v294_v46, %v296_v48  ;;  %v299_v58 = vsel %vm292_vm12, %v296_v48, %v298_v50  ;;  %v226_v62 = vpop.xlane.xlu1 %225 }
 0x178   :  { %v196_v52 = vpop.xlane.xlu2 %195  ;;  %v166_v59 = vpop.xlane.xlu0 %165  ;;  %vm322_vm2 = vcmp.ne.s32.totalorder %v125_v49, %v295_v53  ;;  %vm323_vm4 = vcmp.ne.s32.totalorder %v750_v32, %v297_v54  ;;  %vm324_vm5 = vcmp.ne.s32.totalorder %v755_v47, %v299_v58  ;;  %v227_v6 = vcvt.f32.s32 %v226_v62 }
 0x179   :  { %v197_v61 = vcvt.f32.s32 %v196_v52  ;;  %v167_v56 = vcvt.f32.s32 %v166_v59  ;;  %vm348_vm6 = vmand %vm322_vm2, %vm335_vm3 }
 0x17a   :  { %vm374_vm8 = vmand %vm348_vm6, %vm361_vm7  ;;  %v795_v17 = vadd.s32 %v229_v8, %v227_v6 }
 0x17b   :  { %v771_v5 = vadd.s32 %v199_v55, %v197_v61  ;;  %v773_v4 = vadd.s32 %v169_v57, %v167_v56  ;;  %v387_v7 = vsel %vm374_vm8, %v125_v49, 4294967295  ;;  %vm349_vm11 = vmand %vm323_vm4, %vm336_vm9  ;;  %vm339_vm9 = vcmp.ne.s32.totalorder %v765_v60, 0 }
 0x17c   :  { %400 = vxpose.xlu0.b32.cont [2/13] (short) (narrow) %v387_v7, 8  ;;  %vm777_vm13 = vmand %vm349_vm11, %vm362_vm10  ;;  %vm365_vm11 = vcmp.lt.s32.totalorder %v765_v60, 32  ;;  %v308_v39 = vrot.slane %v795_v17, 7 }
 0x17d   :  { %v388_v2 = vsel %vm777_vm13, %v750_v32, 4294967295  ;;  %vm350_vm15 = vmand %vm324_vm5, %vm337_vm14  ;;  %v300_v9 = vrot.slane %v773_v4, 7  ;;  %v304_v16 = vrot.slane %v771_v5, 7  ;;  %vm338_vm3 = vcmp.ne.s32.totalorder %v773_v4, 0 }
 0x17e   :  { %vm790_vm1 = vmand %vm350_vm15, %vm363_vm0  ;;  %vm364_vm6 = vcmp.lt.s32.totalorder %v773_v4, 32  ;;  %vm340_vm14 = vcmp.ne.s32.totalorder %v771_v5, 0  ;;  %vm366_vm0 = vcmp.lt.s32.totalorder %v771_v5, 32  ;;  %v259_v32 = vshll.u32 %v258_v29, 16 }
 0x17f   :  { %v389_v18 = vsel %vm790_vm1, %v755_v47, 4294967295  ;;  %v301_v19 = vsel %vm292_vm12, %v298_v50, %v300_v9  ;;  %v303_v20 = vsel %vm292_vm12, %v300_v9, %v302_v10  ;;  %v305_v23 = vsel %vm292_vm12, %v302_v10, %v304_v16  ;;  %v271_v27 = vpop.xlane.xlu1 %270 }
 0x180   :  { %v241_v21 = vpop.xlane.xlu2 %240  ;;  %v211_v22 = vpop.xlane.xlu0 %210  ;;  %vm325_vm2 = vcmp.ne.s32.totalorder %v773_v4, %v301_v19  ;;  %vm326_vm4 = vcmp.ne.s32.totalorder %v765_v60, %v303_v20  ;;  %vm327_vm7 = vcmp.ne.s32.totalorder %v771_v5, %v305_v23  ;;  %v272_v24 = vcvt.f32.s32 %v271_v27 }
 0x181   :  { %v242_v25 = vcvt.f32.s32 %v241_v21  ;;  %v212_v26 = vcvt.f32.s32 %v211_v22  ;;  %vm351_vm5 = vmand %vm325_vm2, %vm338_vm3 }
 0x182   :  { %vm811_vm8 = vmand %vm351_vm5, %vm364_vm6  ;;  %v275_v50 = vadd.s32 %v274_v40, %v272_v24 }
 0x183   :  { %v816_v33 = vadd.s32 %v244_v14, %v242_v25  ;;  %v818_v36 = vadd.s32 %v214_v13, %v212_v26  ;;  %v390_v35 = vsel %vm811_vm8, %v773_v4, 4294967295  ;;  %vm352_vm10 = vmand %vm326_vm4, %vm339_vm9  ;;  %vm319_vm8 = vcmask 7175  }
 0x184   :  { %401 = vxpose.xlu0.b32.cont [3/13] (short) (narrow) %v388_v2, 8  ;;  %vm826_vm13 = vmand %vm352_vm10, %vm365_vm11  ;;  %vm342_vm10 = vcmp.ne.s32.totalorder %v795_v17, 0  ;;  %v314_v59 = vrot.slane %v275_v50, 7 }
 0x185   :  { %v391_v11 = vsel %vm826_vm13, %v765_v60, 4294967295  ;;  %vm353_vm15 = vmand %vm327_vm7, %vm340_vm14  ;;  %v306_v12 = vrot.slane %v818_v36, 7  ;;  %v310_v41 = vrot.slane %v816_v33, 7  ;;  %vm341_vm3 = vcmp.ne.s32.totalorder %v818_v36, 0 }
 0x186   :  { %vm839_vm1 = vmand %vm353_vm15, %vm366_vm0  ;;  %vm367_vm6 = vcmp.lt.s32.totalorder %v818_v36, 32  ;;  %vm368_vm13 = vcmp.lt.s32.totalorder %v795_v17, 32  ;;  %vm343_vm15 = vcmp.ne.s32.totalorder %v816_v33, 0 }
 0x187   :  { %v392_v44 = vsel %vm839_vm1, %v771_v5, 4294967295  ;;  %v307_v37 = vsel %vm292_vm12, %v304_v16, %v306_v12  ;;  %v309_v47 = vsel %vm292_vm12, %v306_v12, %v308_v39  ;;  %v311_v45 = vsel %vm292_vm12, %v308_v39, %v310_v41 }
 0x188   :  { %v286_v49 = vpop.xlane.xlu2 %285  ;;  %v256_v38 = vpop.xlane.xlu0 %255  ;;  %vm328_vm2 = vcmp.ne.s32.totalorder %v818_v36, %v307_v37  ;;  %vm329_vm4 = vcmp.ne.s32.totalorder %v795_v17, %v309_v47  ;;  %vm330_vm7 = vcmp.ne.s32.totalorder %v816_v33, %v311_v45  ;;  %vm369_vm1 = vcmp.lt.s32.totalorder %v816_v33, 32 }
 0x189   :  { %v287_v46 = vcvt.f32.s32 %v286_v49  ;;  %v257_v48 = vcvt.f32.s32 %v256_v38  ;;  %vm354_vm5 = vmand %vm328_vm2, %vm341_vm3 }
 0x18a   :  { %vm855_vm9 = vmand %vm354_vm5, %vm367_vm6 }
 0x18b   :  { %v290_v57 = vadd.s32 %v289_v43, %v287_v46  ;;  %v260_v42 = vadd.s32 %v259_v32, %v257_v48  ;;  %v393_v55 = vsel %vm855_vm9, %v818_v36, 4294967295  ;;  %vm355_vm11 = vmand %vm329_vm4, %vm342_vm10 }
 0x18c   :  { %402 = vxpose.xlu0.b32.cont [4/13] (short) (narrow) %v389_v18, 8  ;;  %vm864_vm14 = vmand %vm355_vm11, %vm368_vm13 }
 0x18d   :  { %320 = vst.msk [vmem:[#allocation2 - $0x7] sm:$0x80] %vm319_vm8, %v290_v57  ;;  %v394_v54 = vsel %vm864_vm14, %v795_v17, 4294967295  ;;  %vm356_vm0 = vmand %vm330_vm7, %vm343_vm15  ;;  %v312_v58 = vrot.slane %v260_v42, 7  ;;  %v316_v60 = vrot.slane %v290_v57, 7  ;;  %vm346_vm4 = vcmp.ne.s32.totalorder %v290_v57, 0 }
 0x18e   :  { %vm875_vm2 = vmand %vm356_vm0, %vm369_vm1  ;;  %vm372_vm6 = vcmp.lt.s32.totalorder %v290_v57, 32  ;;  %vm344_vm9 = vcmp.ne.s32.totalorder %v260_v42, 0  ;;  %vm370_vm11 = vcmp.lt.s32.totalorder %v260_v42, 32  ;;  %vm345_vm15 = vcmp.ne.s32.totalorder %v275_v50, 0 }
 0x18f   :  { %v395_v61 = vsel %vm875_vm2, %v816_v33, 4294967295  ;;  %v313_v62 = vsel %vm292_vm12, %v310_v41, %v312_v58  ;;  %v317_v56 = vsel %vm292_vm12, %v314_v59, %v316_v60  ;;  %v315_v5 = vsel %vm292_vm12, %v312_v58, %v314_v59 }
 0x190   :  { %vm333_vm3 = vcmp.ne.s32.totalorder %v290_v57, %v317_v56  ;;  %vm331_vm8 = vcmp.ne.s32.totalorder %v260_v42, %v313_v62  ;;  %vm332_vm14 = vcmp.ne.s32.totalorder %v275_v50, %v315_v5  ;;  %vm371_vm1 = vcmp.lt.s32.totalorder %v275_v50, 32 }
 0x191   :  { %vm359_vm5 = vmand %vm333_vm3, %vm346_vm4  ;;  %vm431_vm3 = vcmask 843776  }
 0x192   :  { %vm884_vm7 = vmand %vm359_vm5, %vm372_vm6 }
 0x193   :  { %v398_v3 = vsel %vm884_vm7, %v290_v57, 4294967295  ;;  %vm357_vm10 = vmand %vm331_vm8, %vm344_vm9 }
 0x194   :  { %403 = vxpose.xlu0.b32.cont [5/13] (short) (narrow) %v390_v35, 8  ;;  %vm383_vm13 = vmand %vm357_vm10, %vm370_vm11 }
 0x195   :  { %v396_v6 = vsel %vm383_vm13, %v260_v42, 4294967295  ;;  %vm358_vm0 = vmand %vm332_vm14, %vm345_vm15 }
 0x196   :  { %vm384_vm2 = vmand %vm358_vm0, %vm371_vm1 }
 0x197   :  { %v397_v4 = vsel %vm384_vm2, %v275_v50, 4294967295 }
 0x19c   :  { %404 = vxpose.xlu0.b32.cont [6/13] (short) (narrow) %v391_v11, 8 }
 0x1a4   :  { %405 = vxpose.xlu0.b32.cont [7/13] (short) (narrow) %v392_v44, 8 }
 0x1ac   :  { %406 = vxpose.xlu0.b32.cont [8/13] (short) (narrow) %v393_v55, 8 }
 0x1b4   :  { %407 = vxpose.xlu0.b32.cont [9/13] (short) (narrow) %v394_v54, 8 }
 0x1bc   :  { %408 = vxpose.xlu0.b32.cont [10/13] (short) (narrow) %v395_v61, 8 }
 0x1c4   :  { %409 = vxpose.xlu0.b32.cont [11/13] (short) (narrow) %v396_v6, 8 }
 0x1cc   :  { %410 = vxpose.xlu0.b32.cont [12/13] (short) (narrow) %v397_v4, 8 }
 0x1d4   :  { %411 = vxpose.xlu0.b32.end [13/13] (short) (narrow) %v398_v3, 8 }
 0x218   :  { %v415_v7 = vpop.trf.xlu0 }
 0x219   :  { %432 = vst.msk [vmem:[#allocation3] sm:$0x1] %vm431_vm3, %v415_v7 }
 0x21a   :  { %443 = dma.vmem_to_hbm [thread:$0]  %s439_s3, 16, %s441_s6, [#allocation4]  }
 0x21b   :  { %476 = dma.done.wait [#allocation4], 16  }
 0x21c   :  { %477 = vsyncadd [#allocation4], 4294967280 }
 0x21d   :  { %448 = vsyncpa [#allocation4], 1 }

// kernel: tpu_custom_call.1
= control target key start
LH: loop header
LB: loop body
LE: loop exit
PB: predicated region body
PF: predicated region fallthrough
CT: control target
= control target key end

     0   :  { %vm29_vm0 = vcmask 261120   ;;  %v27_v26 = vlaneseq  ;;  %s797_s0 = inlined_call_operand.vmem [shape: f32[100,32], index: 0, kind: input, shape index: {}]   ;;  %s798_s1 = inlined_call_operand.vmem [shape: s32[104,1], index: 1, kind: output, shape index: {}]  }
   0x1   :  { %v431_v0 = vld [vmem:[%s797_s0 + $0x20] sm:$0xff]  ;;  %v16_v1 = vld [vmem:[%s797_s0 + $0x10] sm:$0xff]  ;;  %v19_v6 = vld [vmem:[%s797_s0 + $0x28] sm:$0xff] }
   0x2   :  { %v14_v2 = vld [vmem:[%s797_s0] sm:$0xff]  ;;  %v42_v3 = vsel %vm29_vm0, %v431_v0, -inf  ;;  %v36_v4 = vsel %vm29_vm0, %v16_v1, -inf  ;;  %v17_v7 = vld [vmem:[%s797_s0 + $0x18] sm:$0xff]  ;;  %v15_v8 = vld [vmem:[%s797_s0 + $0x8] sm:$0xff]  ;;  %v45_v9 = vsel %vm29_vm0, %v19_v6, -inf }
   0x3   :  { %v30_v5 = vsel %vm29_vm0, %v14_v2, -inf  ;;  %43 = vmax.xlane.f32.xlu2 %v42_v3  ;;  %37 = vmax.xlane.f32.xlu1 %v36_v4  ;;  %v39_v10 = vsel %vm29_vm0, %v17_v7, -inf  ;;  %v33_v11 = vsel %vm29_vm0, %v15_v8, -inf  ;;  %v458_v12 = vld [vmem:[%s797_s0 + $0x40] sm:$0xff]  ;;  %v463_v13 = vld [vmem:[%s797_s0 + $0x38] sm:$0xff]  ;;  %v468_v14 = vld [vmem:[%s797_s0 + $0x30] sm:$0xff] }
   0x4   :  { %31 = vmax.xlane.f32.xlu0 %v30_v5  ;;  %v54_v15 = vsel %vm29_vm0, %v458_v12, -inf  ;;  %v51_v16 = vsel %vm29_vm0, %v463_v13, -inf  ;;  %v48_v17 = vsel %vm29_vm0, %v468_v14, -inf  ;;  %v479_v18 = vld [vmem:[%s797_s0 + $0x58] sm:$0xff]  ;;  %v484_v19 = vld [vmem:[%s797_s0 + $0x50] sm:$0xff]  ;;  %v489_v20 = vld [vmem:[%s797_s0 + $0x48] sm:$0xff] }
   0x5   :  { %v63_v21 = vsel %vm29_vm0, %v479_v18, -inf  ;;  %v60_v22 = vsel %vm29_vm0, %v484_v19, -inf  ;;  %v57_v23 = vsel %vm29_vm0, %v489_v20, -inf  ;;  %v500_v24 = vld [vmem:[%s797_s0 + $0x60] sm:$0xff]  ;;  %v504_v27 = vand.u32 127, %v27_v26 }
   0x6   :  { %v66_v25 = vsel %vm29_vm0, %v500_v24, -inf }
   0xb   :  { %46 = vmax.xlane.f32.xlu2 %v45_v9  ;;  %40 = vmax.xlane.f32.xlu1 %v39_v10 }
   0xc   :  { %34 = vmax.xlane.f32.xlu0 %v33_v11 }
  0x13   :  { %55 = vmax.xlane.f32.xlu2 %v54_v15  ;;  %52 = vmax.xlane.f32.xlu1 %v51_v16 }
  0x14   :  { %49 = vmax.xlane.f32.xlu0 %v48_v17 }
  0x1b   :  { %64 = vmax.xlane.f32.xlu2 %v63_v21  ;;  %61 = vmax.xlane.f32.xlu1 %v60_v22 }
  0x1c   :  { %58 = vmax.xlane.f32.xlu0 %v57_v23 }
  0x24   :  { %67 = vmax.xlane.f32.xlu0 %v66_v25 }
  0x76   :  { %v44_v28 = vpop.xlane.xlu2 %43  ;;  %v38_v29 = vpop.xlane.xlu1 %37 }
  0x77   :  { %vm71_vm1 = vcmp.eq.f32.partialorder %v16_v1, %v38_v29  ;;  %v32_v30 = vpop.xlane.xlu0 %31  ;;  %vm73_vm5 = vcmp.eq.f32.partialorder %v431_v0, %v44_v28 }
  0x78   :  { %v84_v31 = vsel %vm71_vm1, %v504_v27, 32  ;;  %vm69_vm2 = vcmp.eq.f32.partialorder %v14_v2, %v32_v30  ;;  %v86_v50 = vsel %vm73_vm5, %v504_v27, 32 }
  0x79   :  { %v508_v32 = vsel %vm29_vm0, %v84_v31, 2147483647  ;;  %v82_v33 = vsel %vm69_vm2, %v504_v27, 32  ;;  %v546_v55 = vsel %vm29_vm0, %v86_v50, 2147483647 }
  0x7a   :  { %v512_v34 = vsel %vm29_vm0, %v82_v33, 2147483647  ;;  %v127_v35 = vshra.s32 %v508_v32, 16  ;;  %v157_v63 = vshra.s32 %v546_v55, 16  ;;  %v126_v31 = vand.u32 65535, %v508_v32 }
  0x7b   :  { %v97_v36 = vshra.s32 %v512_v34, 16  ;;  %v96_v33 = vand.u32 65535, %v512_v34  ;;  %v156_v50 = vand.u32 65535, %v546_v55 }
  0x7c   :  { %v516_v37 = vcvt.s32.f32 %v127_v35  ;;  %v571_v5 = vcvt.s32.f32 %v157_v63 }
  0x7d   :  { %v518_v38 = vcvt.s32.f32 %v97_v36  ;;  %v98_v36 = vcvt.s32.f32 %v96_v33 }
  0x7e   :  { %v47_v39 = vpop.xlane.xlu2 %46  ;;  %v41_v40 = vpop.xlane.xlu1 %40  ;;  %130 = vmin.xlane.f32.xlu0 %v516_v37 }
  0x7f   :  { %vm74_vm3 = vcmp.eq.f32.partialorder %v19_v6, %v47_v39  ;;  %vm72_vm4 = vcmp.eq.f32.partialorder %v17_v7, %v41_v40  ;;  %100 = vmin.xlane.f32.xlu1 %v518_v38  ;;  %v35_v41 = vpop.xlane.xlu0 %34 }
  0x80   :  { %v87_v42 = vsel %vm74_vm3, %v504_v27, 32  ;;  %v85_v43 = vsel %vm72_vm4, %v504_v27, 32  ;;  %vm70_vm6 = vcmp.eq.f32.partialorder %v15_v8, %v35_v41 }
  0x81   :  { %v526_v44 = vsel %vm29_vm0, %v87_v42, 2147483647  ;;  %v529_v45 = vsel %vm29_vm0, %v85_v43, 2147483647  ;;  %v83_v46 = vsel %vm70_vm6, %v504_v27, 32  ;;  %v417_v42 = vmov 4294967295  }
  0x82   :  { %v533_v47 = vsel %vm29_vm0, %v83_v46, 2147483647  ;;  %v172_v48 = vshra.s32 %v526_v44, 16  ;;  %v142_v49 = vshra.s32 %v529_v45, 16  ;;  %v141_v32 = vand.u32 65535, %v529_v45 }
  0x83   :  { %v112_v51 = vshra.s32 %v533_v47, 16  ;;  %v111_v34 = vand.u32 65535, %v533_v47  ;;  %v171_v41 = vand.u32 65535, %v526_v44 }
  0x84   :  { %v539_v52 = vcvt.s32.f32 %v172_v48  ;;  %v541_v53 = vcvt.s32.f32 %v142_v49 }
  0x85   :  { %v543_v54 = vcvt.s32.f32 %v112_v51  ;;  %v113_v48 = vcvt.s32.f32 %v111_v34  ;;  %v173_v49 = vcvt.s32.f32 %v171_v41 }
  0x86   :  { %v56_v56 = vpop.xlane.xlu2 %55  ;;  %175 = vmin.xlane.f32.xlu0 %v539_v52  ;;  %v53_v57 = vpop.xlane.xlu1 %52 }
  0x87   :  { %vm77_vm7 = vcmp.eq.f32.partialorder %v458_v12, %v56_v56  ;;  %145 = vmin.xlane.f32.xlu1 %v541_v53  ;;  %115 = vmin.xlane.f32.xlu2 %v543_v54  ;;  %v50_v58 = vpop.xlane.xlu0 %49  ;;  %vm76_vm8 = vcmp.eq.f32.partialorder %v463_v13, %v53_v57 }
  0x88   :  { %v90_v59 = vsel %vm77_vm7, %v504_v27, 32  ;;  %vm75_vm9 = vcmp.eq.f32.partialorder %v468_v14, %v50_v58  ;;  %v89_v62 = vsel %vm76_vm8, %v504_v27, 32  ;;  %v158_v58 = vcvt.s32.f32 %v156_v50 }
  0x89   :  { %v556_v60 = vsel %vm29_vm0, %v90_v59, 2147483647  ;;  %v88_v61 = vsel %vm75_vm9, %v504_v27, 32  ;;  %v567_v3 = vsel %vm29_vm0, %v89_v62, 2147483647 }
  0x8a   :  { %v562_v0 = vsel %vm29_vm0, %v88_v61, 2147483647  ;;  %v217_v1 = vshra.s32 %v556_v60, 16  ;;  %v202_v10 = vshra.s32 %v567_v3, 16  ;;  %v216_v56 = vand.u32 65535, %v556_v60 }
  0x8b   :  { %v187_v2 = vshra.s32 %v562_v0, 16  ;;  %v186_v51 = vand.u32 65535, %v562_v0  ;;  %v201_v62 = vand.u32 65535, %v567_v3 }
  0x8c   :  { %v569_v4 = vcvt.s32.f32 %v217_v1  ;;  %v592_v17 = vcvt.s32.f32 %v202_v10  ;;  %v218_v59 = vcvt.s32.f32 %v216_v56 }
  0x8d   :  { %v573_v6 = vcvt.s32.f32 %v187_v2 }
  0x8e   :  { %v65_v7 = vpop.xlane.xlu2 %64  ;;  %220 = vmin.xlane.f32.xlu0 %v569_v4  ;;  %v62_v8 = vpop.xlane.xlu1 %61 }
  0x8f   :  { %vm80_vm10 = vcmp.eq.f32.partialorder %v479_v18, %v65_v7  ;;  %160 = vmin.xlane.f32.xlu2 %v571_v5  ;;  %190 = vmin.xlane.f32.xlu1 %v573_v6  ;;  %v59_v9 = vpop.xlane.xlu0 %58  ;;  %vm79_vm11 = vcmp.eq.f32.partialorder %v484_v19, %v62_v8 }
  0x90   :  { %v93_v11 = vsel %vm80_vm10, %v504_v27, 32  ;;  %vm78_vm12 = vcmp.eq.f32.partialorder %v489_v20, %v59_v9  ;;  %v92_v14 = vsel %vm79_vm11, %v504_v27, 32 }
  0x91   :  { %v584_v12 = vsel %vm29_vm0, %v93_v11, 2147483647  ;;  %v91_v13 = vsel %vm78_vm12, %v504_v27, 32  ;;  %v596_v19 = vsel %vm29_vm0, %v92_v14, 2147483647  ;;  %vm291_vm12 = vcmask 1040384  }
  0x92   :  { %v589_v15 = vsel %vm29_vm0, %v91_v13, 2147483647  ;;  %v262_v16 = vshra.s32 %v584_v12, 16  ;;  %v247_v23 = vshra.s32 %v596_v19, 16  ;;  %v261_v0 = vand.u32 65535, %v584_v12 }
  0x93   :  { %v232_v18 = vshra.s32 %v589_v15, 16  ;;  %v231_v63 = vand.u32 65535, %v589_v15  ;;  %v246_v10 = vand.u32 65535, %v596_v19 }
  0x94   :  { %v598_v20 = vcvt.s32.f32 %v262_v16  ;;  %v611_v28 = vcvt.s32.f32 %v247_v23  ;;  %v263_v7 = vcvt.s32.f32 %v261_v0 }
  0x95   :  { %v600_v21 = vcvt.s32.f32 %v232_v18  ;;  %v248_v14 = vcvt.s32.f32 %v246_v10 }
  0x96   :  { %265 = vmin.xlane.f32.xlu0 %v598_v20 }
  0x97   :  { %205 = vmin.xlane.f32.xlu2 %v592_v17  ;;  %235 = vmin.xlane.f32.xlu1 %v600_v21  ;;  %v68_v22 = vpop.xlane.xlu0 %67 }
  0x98   :  { %vm81_vm13 = vcmp.eq.f32.partialorder %v500_v24, %v68_v22 }
  0x99   :  { %v94_v25 = vsel %vm81_vm13, %v504_v27, 32  ;;  %v128_v27 = vcvt.s32.f32 %v126_v31  ;;  %vm398_vm13 = vcmask 7168  }
  0x9a   :  { %v609_v26 = vsel %vm29_vm0, %v94_v25, 2147483647  ;;  %vm12_vm0 = vcmask 0  }
  0x9b   :  { %v277_v29 = vshra.s32 %v609_v26, 16  ;;  %13 = vst.msk [vmem:[#allocation2] sm:$0x1] %vm12_vm0, %v417_v42  ;;  %v276_v11 = vand.u32 65535, %v609_v26 }
  0x9d   :  { %v614_v30 = vcvt.s32.f32 %v277_v29  ;;  %v278_v15 = vcvt.s32.f32 %v276_v11 }
  0x9f   :  { %250 = vmin.xlane.f32.xlu2 %v611_v28  ;;  %280 = vmin.xlane.f32.xlu1 %v614_v30 }
  0xa2   :  { %v290_v29 = vld [vmem:[#allocation2] sm:$0x1] }
  0xf1   :  { %v620_v24 = vpop.xlane.xlu0 %130 }
  0xf2   :  { %v622_v35 = vpop.xlane.xlu1 %100  ;;  %vm132_vm14 = vcmp.eq.f32.partialorder %v516_v37, %v620_v24  ;;  %v137_v23 = vcvt.f32.s32 %v620_v24 }
  0xf3   :  { %vm102_vm15 = vcmp.eq.f32.partialorder %v518_v38, %v622_v35  ;;  %v133_v39 = vsel %vm132_vm14, %v128_v27, inf  ;;  %v143_v38 = vcvt.s32.f32 %v141_v32  ;;  %v107_v18 = vcvt.f32.s32 %v622_v35 }
  0xf4   :  { %v103_v40 = vsel %vm102_vm15, %v98_v36, inf  ;;  %134 = vmin.xlane.f32.xlu1 %v133_v39  ;;  %v138_v33 = vshll.u32 %v137_v23, 16 }
  0xf5   :  { %104 = vmin.xlane.f32.xlu2 %v103_v40 }
  0xf9   :  { %v631_v43 = vpop.xlane.xlu0 %175 }
  0xfa   :  { %v633_v46 = vpop.xlane.xlu1 %145  ;;  %v635_v37 = vpop.xlane.xlu2 %115  ;;  %vm177_vm1 = vcmp.eq.f32.partialorder %v539_v52, %v631_v43  ;;  %v182_v42 = vcvt.f32.s32 %v631_v43 }
  0xfb   :  { %vm147_vm2 = vcmp.eq.f32.partialorder %v541_v53, %v633_v46  ;;  %vm117_vm3 = vcmp.eq.f32.partialorder %v543_v54, %v635_v37  ;;  %v178_v47 = vsel %vm177_vm1, %v173_v49, inf  ;;  %v188_v54 = vcvt.s32.f32 %v186_v51 }
  0xfc   :  { %v148_v44 = vsel %vm147_vm2, %v143_v38, inf  ;;  %v118_v45 = vsel %vm117_vm3, %v113_v48, inf  ;;  %179 = vmin.xlane.f32.xlu1 %v178_v47  ;;  %v152_v26 = vcvt.f32.s32 %v633_v46  ;;  %v183_v51 = vshll.u32 %v182_v42, 16 }
  0xfd   :  { %149 = vmin.xlane.f32.xlu2 %v148_v44  ;;  %119 = vmin.xlane.f32.xlu0 %v118_v45 }
  0xfe   :  { %v153_v35 = vshll.u32 %v152_v26, 16 }
 0x101   :  { %v646_v57 = vpop.xlane.xlu0 %220 }
 0x102   :  { %v648_v52 = vpop.xlane.xlu2 %160  ;;  %v650_v53 = vpop.xlane.xlu1 %190  ;;  %vm222_vm4 = vcmp.eq.f32.partialorder %v569_v4, %v646_v57 }
 0x103   :  { %vm162_vm5 = vcmp.eq.f32.partialorder %v571_v5, %v648_v52  ;;  %vm192_vm6 = vcmp.eq.f32.partialorder %v573_v6, %v650_v53  ;;  %v223_v61 = vsel %vm222_vm4, %v218_v59, inf  ;;  %v203_v5 = vcvt.s32.f32 %v201_v62 }
 0x104   :  { %v163_v55 = vsel %vm162_vm5, %v158_v58, inf  ;;  %v193_v60 = vsel %vm192_vm6, %v188_v54, inf  ;;  %224 = vmin.xlane.f32.xlu1 %v223_v61  ;;  %v233_v6 = vcvt.s32.f32 %v231_v63  ;;  %v167_v46 = vcvt.f32.s32 %v648_v52 }
 0x105   :  { %164 = vmin.xlane.f32.xlu0 %v163_v55  ;;  %194 = vmin.xlane.f32.xlu2 %v193_v60  ;;  %v227_v63 = vcvt.f32.s32 %v646_v57 }
 0x106   :  { %v168_v43 = vshll.u32 %v167_v46, 16 }
 0x109   :  { %v661_v1 = vpop.xlane.xlu0 %265 }
 0x10a   :  { %v663_v2 = vpop.xlane.xlu2 %205  ;;  %v665_v4 = vpop.xlane.xlu1 %235  ;;  %vm267_vm7 = vcmp.eq.f32.partialorder %v598_v20, %v661_v1 }
 0x10b   :  { %vm207_vm8 = vcmp.eq.f32.partialorder %v592_v17, %v663_v2  ;;  %vm237_vm9 = vcmp.eq.f32.partialorder %v600_v21, %v665_v4  ;;  %v268_v9 = vsel %vm267_vm7, %v263_v7, inf  ;;  %v108_v21 = vshll.u32 %v107_v18, 16 }
 0x10c   :  { %v208_v3 = vsel %vm207_vm8, %v203_v5, inf  ;;  %v238_v8 = vsel %vm237_vm9, %v233_v6, inf  ;;  %269 = vmin.xlane.f32.xlu1 %v268_v9  ;;  %v212_v0 = vcvt.f32.s32 %v663_v2  ;;  %v242_v5 = vcvt.f32.s32 %v665_v4 }
 0x10d   :  { %209 = vmin.xlane.f32.xlu0 %v208_v3  ;;  %239 = vmin.xlane.f32.xlu2 %v238_v8  ;;  %v228_v9 = vshll.u32 %v227_v63, 16 }
 0x10e   :  { %v213_v10 = vshll.u32 %v212_v0, 16  ;;  %v243_v11 = vshll.u32 %v242_v5, 16 }
 0x112   :  { %v675_v12 = vpop.xlane.xlu2 %250  ;;  %v677_v13 = vpop.xlane.xlu1 %280 }
 0x113   :  { %vm252_vm10 = vcmp.eq.f32.partialorder %v611_v28, %v675_v12  ;;  %vm282_vm11 = vcmp.eq.f32.partialorder %v614_v30, %v677_v13  ;;  %v122_v28 = vcvt.f32.s32 %v635_v37  ;;  %v197_v37 = vcvt.f32.s32 %v650_v53 }
 0x114   :  { %v253_v16 = vsel %vm252_vm10, %v248_v14, inf  ;;  %v283_v17 = vsel %vm282_vm11, %v278_v15, inf  ;;  %v257_v26 = vcvt.f32.s32 %v675_v12 }
 0x115   :  { %254 = vmin.xlane.f32.xlu0 %v253_v16  ;;  %284 = vmin.xlane.f32.xlu2 %v283_v17  ;;  %v123_v36 = vshll.u32 %v122_v28, 16  ;;  %v198_v56 = vshll.u32 %v197_v37, 16  ;;  %v287_v28 = vcvt.f32.s32 %v677_v13 }
 0x167   :  { %v135_v19 = vpop.xlane.xlu1 %134 }
 0x168   :  { %v105_v20 = vpop.xlane.xlu2 %104  ;;  %v136_v31 = vcvt.f32.s32 %v135_v19 }
 0x169   :  { %v106_v22 = vcvt.f32.s32 %v105_v20 }
 0x16a   :  { %v688_v24 = vadd.s32 %v138_v33, %v136_v31 }
 0x16b   :  { %v109_v25 = vadd.s32 %v108_v21, %v106_v22 }
 0x16c   :  { %v295_v44 = vrot.slane %v688_v24, 7  ;;  %vm335_vm11 = vcmp.ne.s32.totalorder %v688_v24, 0 }
 0x16d   :  { %v292_v30 = vrot.slane %v109_v25, 7  ;;  %vm333_vm15 = vcmp.ne.s32.totalorder %v109_v25, 0  ;;  %vm359_vm1 = vcmp.lt.s32.totalorder %v109_v25, 32 }
 0x16f   :  { %v317_v27 = vsel %vm291_vm12, %v290_v29, %v292_v30  ;;  %v180_v34 = vpop.xlane.xlu1 %179 }
 0x170   :  { %vm320_vm14 = vcmp.ne.s32.totalorder %v109_v25, %v317_v27  ;;  %v150_v39 = vpop.xlane.xlu2 %149  ;;  %v120_v40 = vpop.xlane.xlu0 %119  ;;  %v181_v47 = vcvt.f32.s32 %v180_v34 }
 0x171   :  { %vm346_vm0 = vmand %vm320_vm14, %vm333_vm15  ;;  %v151_v32 = vcvt.f32.s32 %v150_v39  ;;  %v121_v41 = vcvt.f32.s32 %v120_v40  ;;  %vm361_vm15 = vcmp.lt.s32.totalorder %v688_v24, 32  ;;  %v288_v39 = vshll.u32 %v287_v28, 16 }
 0x172   :  { %vm372_vm2 = vmand %vm346_vm0, %vm359_vm1  ;;  %v702_v55 = vadd.s32 %v183_v51, %v181_v47 }
 0x173   :  { %v385_v38 = vsel %vm372_vm2, %v109_v25, 4294967295  ;;  %v154_v48 = vadd.s32 %v153_v35, %v151_v32  ;;  %v124_v49 = vadd.s32 %v123_v36, %v121_v41  ;;  %v272_v25 = vcvt.f32.s32 %v661_v1 }
 0x174   :  { %399 = vst.msk [vmem:[%s798_s1] sm:$0xff] %vm398_vm13, %v385_v38  ;;  %v301_v57 = vrot.slane %v702_v55, 7  ;;  %v258_v36 = vshll.u32 %v257_v26, 16 }
 0x175   :  { %v297_v45 = vrot.slane %v154_v48, 7  ;;  %v293_v50 = vrot.slane %v124_v49, 7  ;;  %vm336_vm4 = vcmp.ne.s32.totalorder %v154_v48, 0  ;;  %vm362_vm8 = vcmp.lt.s32.totalorder %v154_v48, 32 }
 0x176   :  { %vm334_vm10 = vcmp.ne.s32.totalorder %v124_v49, 0  ;;  %vm360_vm1 = vcmp.lt.s32.totalorder %v124_v49, 32  ;;  %v273_v35 = vshll.u32 %v272_v25, 16 }
 0x177   :  { %v298_v52 = vsel %vm291_vm12, %v295_v44, %v297_v45  ;;  %v294_v53 = vsel %vm291_vm12, %v292_v30, %v293_v50  ;;  %v296_v58 = vsel %vm291_vm12, %v293_v50, %v295_v44  ;;  %v225_v61 = vpop.xlane.xlu1 %224 }
 0x178   :  { %vm323_vm3 = vcmp.ne.s32.totalorder %v154_v48, %v298_v52  ;;  %vm321_vm5 = vcmp.ne.s32.totalorder %v124_v49, %v294_v53  ;;  %vm322_vm6 = vcmp.ne.s32.totalorder %v688_v24, %v296_v58  ;;  %v195_v54 = vpop.xlane.xlu2 %194  ;;  %v165_v59 = vpop.xlane.xlu0 %164  ;;  %v226_v4 = vcvt.f32.s32 %v225_v61 }
 0x179   :  { %vm349_vm7 = vmand %vm323_vm3, %vm336_vm4  ;;  %v196_v60 = vcvt.f32.s32 %v195_v54  ;;  %v166_v62 = vcvt.f32.s32 %v165_v59 }
 0x17a   :  { %vm375_vm9 = vmand %vm349_vm7, %vm362_vm8  ;;  %v736_v21 = vadd.s32 %v228_v9, %v226_v4 }
 0x17b   :  { %v388_v6 = vsel %vm375_vm9, %v154_v48, 4294967295  ;;  %vm347_vm14 = vmand %vm321_vm5, %vm334_vm10  ;;  %v709_v7 = vadd.s32 %v198_v56, %v196_v60  ;;  %v169_v3 = vadd.s32 %v168_v43, %v166_v62 }
 0x17c   :  { %402 = vst.msk [vmem:[%s798_s1 + $0x18] sm:$0xff] %vm398_vm13, %v388_v6  ;;  %vm348_vm0 = vmand %vm322_vm6, %vm335_vm11  ;;  %v307_v1 = vrot.slane %v736_v21, 7 }
 0x17d   :  { %vm373_vm2 = vmand %vm347_vm14, %vm360_vm1  ;;  %v303_v2 = vrot.slane %v709_v7, 7  ;;  %v299_v8 = vrot.slane %v169_v3, 7  ;;  %vm339_vm5 = vcmp.ne.s32.totalorder %v709_v7, 0  ;;  %vm365_vm9 = vcmp.lt.s32.totalorder %v709_v7, 32 }
 0x17e   :  { %vm374_vm3 = vmand %vm348_vm0, %vm361_vm15  ;;  %v386_v14 = vsel %vm373_vm2, %v124_v49, 4294967295  ;;  %vm337_vm11 = vcmp.ne.s32.totalorder %v169_v3, 0  ;;  %vm338_vm14 = vcmp.ne.s32.totalorder %v702_v55, 0  ;;  %vm364_vm0 = vcmp.lt.s32.totalorder %v702_v55, 32 }
 0x17f   :  { %v387_v15 = vsel %vm374_vm3, %v688_v24, 4294967295  ;;  %400 = vst.msk [vmem:[%s798_s1 + $0x8] sm:$0xff] %vm398_vm13, %v386_v14  ;;  %v304_v16 = vsel %vm291_vm12, %v301_v57, %v303_v2  ;;  %v300_v17 = vsel %vm291_vm12, %v297_v45, %v299_v8  ;;  %v302_v18 = vsel %vm291_vm12, %v299_v8, %v301_v57  ;;  %v270_v29 = vpop.xlane.xlu1 %269 }
 0x180   :  { %401 = vst.msk [vmem:[%s798_s1 + $0x10] sm:$0xff] %vm398_vm13, %v387_v15  ;;  %vm326_vm4 = vcmp.ne.s32.totalorder %v709_v7, %v304_v16  ;;  %vm324_vm6 = vcmp.ne.s32.totalorder %v169_v3, %v300_v17  ;;  %vm325_vm7 = vcmp.ne.s32.totalorder %v702_v55, %v302_v18  ;;  %v240_v19 = vpop.xlane.xlu2 %239  ;;  %v210_v20 = vpop.xlane.xlu0 %209  ;;  %vm363_vm2 = vcmp.lt.s32.totalorder %v169_v3, 32 }
 0x181   :  { %vm352_vm8 = vmand %vm326_vm4, %vm339_vm5  ;;  %v241_v22 = vcvt.f32.s32 %v240_v19  ;;  %v211_v23 = vcvt.f32.s32 %v210_v20  ;;  %v271_v13 = vcvt.f32.s32 %v270_v29 }
 0x182   :  { %vm378_vm10 = vmand %vm352_vm8, %vm365_vm9 }
 0x183   :  { %v391_v30 = vsel %vm378_vm10, %v709_v7, 4294967295  ;;  %vm350_vm15 = vmand %vm324_vm6, %vm337_vm11  ;;  %v244_v31 = vadd.s32 %v243_v11, %v241_v22  ;;  %v214_v33 = vadd.s32 %v213_v10, %v211_v23  ;;  %v274_v37 = vadd.s32 %v273_v35, %v271_v13 }
 0x184   :  { %405 = vst.msk [vmem:[%s798_s1 + $0x30] sm:$0xff] %vm398_vm13, %v391_v30  ;;  %vm351_vm1 = vmand %vm325_vm7, %vm338_vm14 }
 0x185   :  { %vm376_vm3 = vmand %vm350_vm15, %vm363_vm2  ;;  %v309_v12 = vrot.slane %v244_v31, 7  ;;  %v305_v27 = vrot.slane %v214_v33, 7  ;;  %vm342_vm6 = vcmp.ne.s32.totalorder %v244_v31, 0  ;;  %vm368_vm10 = vcmp.lt.s32.totalorder %v244_v31, 32 }
 0x186   :  { %vm377_vm4 = vmand %vm351_vm1, %vm364_vm0  ;;  %v389_v40 = vsel %vm376_vm3, %v169_v3, 4294967295  ;;  %vm340_vm14 = vcmp.ne.s32.totalorder %v214_v33, 0  ;;  %vm318_vm15 = vcmask 7175   ;;  %vm341_vm0 = vcmp.ne.s32.totalorder %v736_v21, 0 }
 0x187   :  { %v390_v24 = vsel %vm377_vm4, %v702_v55, 4294967295  ;;  %403 = vst.msk [vmem:[%s798_s1 + $0x20] sm:$0xff] %vm398_vm13, %v389_v40  ;;  %v310_v32 = vsel %vm291_vm12, %v307_v1, %v309_v12  ;;  %v306_v34 = vsel %vm291_vm12, %v303_v2, %v305_v27  ;;  %v308_v41 = vsel %vm291_vm12, %v305_v27, %v307_v1 }
 0x188   :  { %404 = vst.msk [vmem:[%s798_s1 + $0x28] sm:$0xff] %vm398_vm13, %v390_v24  ;;  %vm329_vm5 = vcmp.ne.s32.totalorder %v244_v31, %v310_v32  ;;  %vm327_vm7 = vcmp.ne.s32.totalorder %v214_v33, %v306_v34  ;;  %vm328_vm8 = vcmp.ne.s32.totalorder %v736_v21, %v308_v41  ;;  %v285_v42 = vpop.xlane.xlu2 %284  ;;  %v255_v46 = vpop.xlane.xlu0 %254  ;;  %vm366_vm3 = vcmp.lt.s32.totalorder %v214_v33, 32 }
 0x189   :  { %vm355_vm9 = vmand %vm329_vm5, %vm342_vm6  ;;  %v286_v38 = vcvt.f32.s32 %v285_v42  ;;  %v256_v48 = vcvt.f32.s32 %v255_v46  ;;  %vm367_vm4 = vcmp.lt.s32.totalorder %v736_v21, 32  ;;  %v313_v47 = vrot.slane %v274_v37, 7 }
 0x18a   :  { %vm381_vm11 = vmand %vm355_vm9, %vm368_vm10 }
 0x18b   :  { %v394_v49 = vsel %vm381_vm11, %v244_v31, 4294967295  ;;  %vm353_vm1 = vmand %vm327_vm7, %vm340_vm14  ;;  %v289_v44 = vadd.s32 %v288_v39, %v286_v38  ;;  %v259_v45 = vadd.s32 %v258_v36, %v256_v48 }
 0x18c   :  { %408 = vst.msk [vmem:[%s798_s1 + $0x48] sm:$0xff] %vm398_vm13, %v394_v49  ;;  %vm354_vm2 = vmand %vm328_vm8, %vm341_vm0 }
 0x18d   :  { %vm379_vm5 = vmand %vm353_vm1, %vm366_vm3  ;;  %v315_v50 = vrot.slane %v289_v44, 7  ;;  %319 = vst.msk [vmem:[#allocation2 - $0x7] sm:$0x80] %vm318_vm15, %v289_v44  ;;  %v311_v51 = vrot.slane %v259_v45, 7  ;;  %vm345_vm8 = vcmp.ne.s32.totalorder %v289_v44, 0  ;;  %vm371_vm11 = vcmp.lt.s32.totalorder %v289_v44, 32 }
 0x18e   :  { %vm380_vm6 = vmand %vm354_vm2, %vm367_vm4  ;;  %v392_v43 = vsel %vm379_vm5, %v214_v33, 4294967295  ;;  %vm343_vm0 = vcmp.ne.s32.totalorder %v259_v45, 0  ;;  %vm344_vm1 = vcmp.ne.s32.totalorder %v274_v37, 0  ;;  %vm369_vm3 = vcmp.lt.s32.totalorder %v259_v45, 32 }
 0x18f   :  { %v393_v56 = vsel %vm380_vm6, %v736_v21, 4294967295  ;;  %406 = vst.msk [vmem:[%s798_s1 + $0x38] sm:$0xff] %vm398_vm13, %v392_v43  ;;  %v316_v52 = vsel %vm291_vm12, %v313_v47, %v315_v50  ;;  %v312_v53 = vsel %vm291_vm12, %v309_v12, %v311_v51  ;;  %v314_v58 = vsel %vm291_vm12, %v311_v51, %v313_v47 }
 0x190   :  { %407 = vst.msk [vmem:[%s798_s1 + $0x40] sm:$0xff] %vm398_vm13, %v393_v56  ;;  %vm332_vm7 = vcmp.ne.s32.totalorder %v289_v44, %v316_v52  ;;  %vm330_vm9 = vcmp.ne.s32.totalorder %v259_v45, %v312_v53  ;;  %vm331_vm14 = vcmp.ne.s32.totalorder %v274_v37, %v314_v58  ;;  %vm370_vm4 = vcmp.lt.s32.totalorder %v274_v37, 32 }
 0x191   :  { %vm358_vm10 = vmand %vm332_vm7, %vm345_vm8 }
 0x192   :  { %vm384_vm15 = vmand %vm358_vm10, %vm371_vm11 }
 0x193   :  { %v397_v54 = vsel %vm384_vm15, %v289_v44, 4294967295  ;;  %vm356_vm2 = vmand %vm330_vm9, %vm343_vm0 }
 0x194   :  { %411 = vst.msk [vmem:[%s798_s1 + $0x60] sm:$0xff] %vm398_vm13, %v397_v54  ;;  %vm357_vm12 = vmand %vm331_vm14, %vm344_vm1 }
 0x195   :  { %vm382_vm5 = vmand %vm356_vm2, %vm369_vm3 }
 0x196   :  { %vm383_vm6 = vmand %vm357_vm12, %vm370_vm4  ;;  %v395_v59 = vsel %vm382_vm5, %v259_v45, 4294967295 }
 0x197   :  { %v396_v55 = vsel %vm383_vm6, %v274_v37, 4294967295  ;;  %409 = vst.msk [vmem:[%s798_s1 + $0x50] sm:$0xff] %vm398_vm13, %v395_v59 }
 0x198   :  { %410 = vst.msk [vmem:[%s798_s1 + $0x58] sm:$0xff] %vm398_vm13, %v396_v55 }

</bundles_post_ra>
